<compile_context>
chip_gen: v7x
topology: tpu7x:2x2x1
jax: 0.10.0
libtpu: 0.0.40
codegen_flags: <defaults>
</compile_context>

<pallas_src>
import functools

import jax
import jax.numpy as jnp
import numpy as np
from jax import lax
from jax.experimental import pallas as pl
from jax.experimental.pallas import tpu as pltpu


def _ssm_kernel(u_ref, delta_ref, bin_ref, cin_ref, a_ref, dvec_ref,
                sB_ref, bB_ref, sC_ref, bC_ref,
                out_ref, x_ref, *, group):
    """One grid step = (batch, D-tile, L-chunk).

    Layout (D on lanes, N on sublanes):
      u_ref, delta_ref, out_ref : (L_CHUNK, TILE_D)
      bin_ref, cin_ref          : (L_CHUNK, N, 1)   (trailing 1 lane-broadcasts over D)
      a_ref, s*/b*_ref          : (N, TILE_D)
      dvec_ref                  : (1, TILE_D)
      x_ref (carried SSM state) : (N, TILE_D)
    """
    li = pl.program_id(2)

    # Reset the carried SSM state at the first L-chunk of every (batch, d-tile).
    @pl.when(li == 0)
    def _():
        x_ref[...] = jnp.zeros_like(x_ref)

    lc, td = u_ref.shape
    G = group

    # Small per-(d-tile) parameters: load once per chunk.
    a = a_ref[...]            # (n, td)
    sB = sB_ref[...]
    bB = bB_ref[...]
    sC = sC_ref[...]
    bC = bC_ref[...]
    dvec = dvec_ref[...]      # (1, td)

    def body(g, x):
        t0 = pl.multiple_of(g * G, G)
        # Per-group slices only (keeps live ranges small; no whole-chunk loads).
        del_blk = delta_ref[pl.ds(t0, G), :]       # (G, td)
        u_blk = u_ref[pl.ds(t0, G), :]             # (G, td)
        b_blk = bin_ref[pl.ds(t0, G), :, :]        # (G, n, 1)
        c_blk = cin_ref[pl.ds(t0, G), :, :]        # (G, n, 1)

        ys = []
        for s in range(G):                         # static unroll
            del_s = del_blk[s:s + 1, :]            # (1, td)
            u_s = u_blk[s:s + 1, :]                # (1, td)
            dA_s = jnp.exp(del_s * a)              # (n, td)  EUP, overlaps the scan
            b4_s = sB * b_blk[s] + bB              # (n, td)  fused ParameterTransform(B)
            c4_s = sC * c_blk[s] + bC              # (n, td)  fused ParameterTransform(C)
            x = dA_s * x + (del_s * u_s) * b4_s    # (n, td)  recurrence
            ys.append(jnp.sum(x * c4_s, axis=0, keepdims=True))   # (1, td) sublane reduce
        y_blk = jnp.concatenate(ys, axis=0) if G > 1 else ys[0]   # (G, td)
        # y + u*D skip: one lane-dense store per group, no read-modify-write of out_ref.
        out_ref[pl.ds(t0, G), :] = y_blk + u_blk * dvec
        return x

    x_ref[...] = lax.fori_loop(0, lc // G, body, x_ref[...])


def _pad(x, m):
    return ((x + m - 1) // m) * m


def _vmem_estimate(lc, td, n):
    """Rough f32 VMEM footprint (bytes) of one grid step, incl. double buffering."""
    big = _pad(lc, 8) * _pad(td, 128) * 4                # one (lc, td) block
    bc = lc * _pad(n, 8) * 128 * 4                       # one padded (lc, n, 1) block
    params = 5 * _pad(n, 8) * _pad(td, 128) * 4 + _pad(td, 128) * 4
    scratch = _pad(n, 8) * _pad(td, 128) * 4             # carried state
    # u, delta, out double-buffered; B and C double-buffered; params double-buffered.
    return 2 * 3 * big + 2 * 2 * bc + 2 * params + scratch


_VMEM_TILE_BUDGET = 12 * 1024 * 1024   # comfortably inside v5e/v7x scoped VMEM


def param_transform_selective_scan(u, delta, A, Bm, Cm, Dv, sB, bB, sC, bC,
                                   *, tile_d=None, l_chunk=None):
    """u, delta: (b, d, l); Bm, Cm: (b, n, l); A, sB, bB, sC, bC: (d, n); Dv: (d,).
    Returns (b, d, l) float32."""
    b, d, L = u.shape
    n = A.shape[1]

    # --- D tile: wide enough to hide the scan's dependent mul+add latency, while
    # keeping the megacore-parallel extent b * (d / tile_d) >= 2 (v7x: 2 TCs).
    if tile_d is None:
        if d % 256 == 0:
            tile_d = 256
        elif d % 128 == 0:
            tile_d = 128
        else:
            tile_d = d
        while b * (d // tile_d) < 2 and tile_d % 256 == 0:
            tile_d //= 2
    assert d % tile_d == 0 and (tile_d % 128 == 0 or tile_d == d)

    # --- L chunk: largest chunk (<= 256) dividing L that fits the VMEM budget.
    if l_chunk is None:
        cands = [c for c in (256, 128, 64, 32, 16, 8) if L % c == 0]
        if not cands:
            l_chunk = L
        else:
            l_chunk = cands[-1]
            for c in cands:
                if _vmem_estimate(c, tile_d, n) <= _VMEM_TILE_BUDGET:
                    l_chunk = c
                    break
    assert L % l_chunk == 0

    # --- timesteps per unrolled group: bounded so live (n, tile_d) values (x, dA,
    # dBu, c4, products) stay well inside the 64-vreg file on all generations.
    v = pl.cdiv(max(n, 1), 8) * pl.cdiv(tile_d, 128)   # vregs per (n, tile_d) f32 value
    if v <= 1:
        g_target = 8
    elif v <= 2:
        g_target = 4
    else:
        g_target = 2
    group = 1
    for g in (8, 4, 2, 1):
        if g <= g_target and l_chunk % g == 0:
            group = g
            break
    assert l_chunk % group == 0

    f32 = jnp.float32
    # Time-major with D on the last (lane) axis.
    # TODO(synk): the (b,d,l)<->(b,l,d) transposes below are extra HBM passes; they can
    #             be dropped if the surrounding model already keeps u/delta/out time-major.
    u_t = jnp.transpose(u, (0, 2, 1)).astype(f32)            # (b, L, d)
    delta_t = jnp.transpose(delta, (0, 2, 1)).astype(f32)    # (b, L, d)
    # B / C as (b, L, n, 1): N on sublanes; trailing unit dim lane-broadcasts over D in-kernel.
    B_t = jnp.transpose(Bm, (0, 2, 1)).astype(f32)[:, :, :, None]
    C_t = jnp.transpose(Cm, (0, 2, 1)).astype(f32)[:, :, :, None]
    # Per-channel parameters with D on lanes.
    A_t = jnp.transpose(A).astype(f32)                       # (n, d)
    sB_t = jnp.transpose(sB).astype(f32)
    bB_t = jnp.transpose(bB).astype(f32)
    sC_t = jnp.transpose(sC).astype(f32)
    bC_t = jnp.transpose(bC).astype(f32)
    dvec = Dv.reshape(1, d).astype(f32)

    grid = (b, d // tile_d, L // l_chunk)

    def dn_spec():
        return pl.BlockSpec((n, tile_d), lambda bi, di, li: (0, di))

    est = _vmem_estimate(l_chunk, tile_d, n)
    vmem_limit = int(min(max(32 * 1024 * 1024, 2 * est), 64 * 1024 * 1024))

    cost = pl.CostEstimate(
        flops=int(b * d * L * (8 * n + 2)),
        transcendentals=int(b * d * L * n),
        bytes_accessed=int(4 * (3 * b * d * L + 2 * b * n * L + 5 * d * n + d)),
    )

    out = pl.pallas_call(
        functools.partial(_ssm_kernel, group=group),
        out_shape=jax.ShapeDtypeStruct((b, L, d), f32),
        grid_spec=pltpu.PrefetchScalarGridSpec(
            num_scalar_prefetch=0,
            grid=grid,
            in_specs=[
                pl.BlockSpec((None, l_chunk, tile_d), lambda bi, di, li: (bi, li, di)),   # u
                pl.BlockSpec((None, l_chunk, tile_d), lambda bi, di, li: (bi, li, di)),   # delta
                pl.BlockSpec((None, l_chunk, n, 1), lambda bi, di, li: (bi, li, 0, 0)),   # B
                pl.BlockSpec((None, l_chunk, n, 1), lambda bi, di, li: (bi, li, 0, 0)),   # C
                dn_spec(),                                                                 # A
                pl.BlockSpec((1, tile_d), lambda bi, di, li: (0, di)),                     # D (skip)
                dn_spec(), dn_spec(), dn_spec(), dn_spec(),                                # sB,bB,sC,bC
            ],
            out_specs=pl.BlockSpec((None, l_chunk, tile_d),
                                   lambda bi, di, li: (bi, li, di)),
            scratch_shapes=[
                pltpu.VMEM((n, tile_d), f32),      # carried SSM state x
            ],
        ),
        compiler_params=pltpu.CompilerParams(
            dimension_semantics=("parallel", "parallel", "arbitrary"),
            vmem_limit_bytes=vmem_limit),
        cost_estimate=cost,
    )(u_t, delta_t, B_t, C_t, A_t, dvec, sB_t, bB_t, sC_t, bC_t)

    return jnp.transpose(out, (0, 2, 1))   # back to (b, d, l)


def _reference(u, delta, A, Bm, Cm, Dv, sB, bB, sC, bC):
    """Pure-JAX reference of ParameterTransform + selective_scan_ref."""
    B4 = sB[None, :, :, None] * Bm[:, None, :, :] + bB[None, :, :, None]   # (b,d,n,l)
    C4 = sC[None, :, :, None] * Cm[:, None, :, :] + bC[None, :, :, None]
    dA = jnp.exp(delta[:, :, :, None] * A[None, :, None, :])               # (b,d,l,n)
    dBu = (delta * u)[:, :, :, None] * jnp.transpose(B4, (0, 1, 3, 2))     # (b,d,l,n)
    b, d, L = u.shape
    n = A.shape[1]

    def step(x, t):
        x = dA[:, :, t] * x + dBu[:, :, t]                                 # (b,d,n)
        y = jnp.sum(x * C4[:, :, :, t], axis=-1)                           # (b,d)
        return x, y

    _, ys = lax.scan(step, jnp.zeros((b, d, n), u.dtype), jnp.arange(L))
    y = jnp.moveaxis(ys, 0, -1)                                            # (b,d,l)
    return y + u * Dv[None, :, None]


if __name__ == "__main__":
    key = jax.random.PRNGKey(0)
    # small but tiling-exercising shapes: 2 batches x 2 D-tiles x 2 L-chunks
    b, d, n, L = 2, 256, 4, 32
    ks = jax.random.split(key, 10)

    # selective-scan inputs (mamba conventions)
    u = jax.random.normal(ks[0], (b, d, L), jnp.float32)
    delta = jax.nn.softplus(jax.random.normal(ks[1], (b, d, L), jnp.float32))
    A = -jnp.exp(jax.random.normal(ks[2], (d, n), jnp.float32))
    Bm = jax.random.normal(ks[3], (b, n, L), jnp.float32)
    Cm = jax.random.normal(ks[4], (b, n, L), jnp.float32)
    Dv = jax.random.normal(ks[5], (d,), jnp.float32)

    # ParameterTransform parameters for adapters on 'B' and 'C'
    # (scale ~ 'one' perturbed, bias ~ small; shapes (1,d,n,1) squeezed to (d,n))
    sB = 1.0 + 0.1 * jax.random.normal(ks[6], (d, n), jnp.float32)
    bB = 0.1 * jax.random.normal(ks[7], (d, n), jnp.float32)
    sC = 1.0 + 0.1 * jax.random.normal(ks[8], (d, n), jnp.float32)
    bC = 0.1 * jax.random.normal(ks[9], (d, n), jnp.float32)

    ref = _reference(u, delta, A, Bm, Cm, Dv, sB, bB, sC, bC)

    # 1) explicit small tiles: exercises multi-batch x multi-d-tile x multi-chunk grid
    #    and the carried state across L-chunks (group = 8 path).
    out1 = param_transform_selective_scan(u, delta, A, Bm, Cm, Dv, sB, bB, sC, bC,
                                          tile_d=128, l_chunk=16)
    out1 = jax.block_until_ready(out1)
    np.testing.assert_allclose(np.asarray(out1), np.asarray(ref), rtol=1e-4, atol=1e-4)

    # 2) default (budget-derived) tiles: wider tile_d, group = 4 path.
    out2 = param_transform_selective_scan(u, delta, A, Bm, Cm, Dv, sB, bB, sC, bC)
    out2 = jax.block_until_ready(out2)
    np.testing.assert_allclose(np.asarray(out2), np.asarray(ref), rtol=1e-4, atol=1e-4)

    print("KERNEL_OK")
</pallas_src>

<mosaic_0001>
module attributes {stable_mosaic.version = 11 : i64} {
  func.func @_ssm_kernel(%arg0: i32, %arg1: i32, %arg2: i32, %arg3: memref<1x16x128xf32, #tpu.memory_space<vmem>>, %arg4: memref<1x16x128xf32, #tpu.memory_space<vmem>>, %arg5: memref<1x16x4x1xf32, #tpu.memory_space<vmem>>, %arg6: memref<1x16x4x1xf32, #tpu.memory_space<vmem>>, %arg7: memref<4x128xf32, #tpu.memory_space<vmem>>, %arg8: memref<1x128xf32, #tpu.memory_space<vmem>>, %arg9: memref<4x128xf32, #tpu.memory_space<vmem>>, %arg10: memref<4x128xf32, #tpu.memory_space<vmem>>, %arg11: memref<4x128xf32, #tpu.memory_space<vmem>>, %arg12: memref<4x128xf32, #tpu.memory_space<vmem>>, %arg13: memref<1x16x128xf32, #tpu.memory_space<vmem>>, %arg14: memref<4x128xf32, #tpu.memory_space<vmem>>) attributes {dimension_semantics = [#tpu.dimension_semantics<parallel>, #tpu.dimension_semantics<parallel>, #tpu.dimension_semantics<arbitrary>], iteration_bounds = array<i64: 2, 2, 2>, scalar_prefetch = 0 : i64, scratch_operands = 1 : i64, tpu.core_type = #tpu.core_type<tc>, window_params = [{transform_indices = @transform_0, window_bounds = array<i64: 1, 16, 128>}, {transform_indices = @transform_1, window_bounds = array<i64: 1, 16, 128>}, {transform_indices = @transform_2, window_bounds = array<i64: 1, 16, 4, 1>}, {transform_indices = @transform_3, window_bounds = array<i64: 1, 16, 4, 1>}, {transform_indices = @transform_4, window_bounds = array<i64: 4, 128>}, {transform_indices = @transform_5, window_bounds = array<i64: 1, 128>}, {transform_indices = @transform_6, window_bounds = array<i64: 4, 128>}, {transform_indices = @transform_7, window_bounds = array<i64: 4, 128>}, {transform_indices = @transform_8, window_bounds = array<i64: 4, 128>}, {transform_indices = @transform_9, window_bounds = array<i64: 4, 128>}, {transform_indices = @transform_10, window_bounds = array<i64: 1, 16, 128>}]} {
    %c0_i32 = arith.constant 0 : i32
    %0 = arith.cmpi eq, %arg2, %c0_i32 : i32
    %1 = arith.extui %0 : i1 to i32
    %c0_i32_0 = arith.constant 0 : i32
    %2 = arith.cmpi ne, %1, %c0_i32_0 : i32
    scf.if %2 {
      %cst = arith.constant 0.000000e+00 : f32
      %13 = vector.broadcast %cst : f32 to vector<4x128xf32>
      %c0_18 = arith.constant 0 : index
      %c0_19 = arith.constant 0 : index
      %14 = vector.load %arg14[%c0_18, %c0_19] : memref<4x128xf32, #tpu.memory_space<vmem>>, vector<4x128xf32>
      tpu.vector_store %arg14[%c0_18, %c0_19], %13 {strides = array<i32>} : memref<4x128xf32, #tpu.memory_space<vmem>>, vector<4x128xf32>,
    } else {
    }
    %c0 = arith.constant 0 : index
    %c0_1 = arith.constant 0 : index
    %3 = vector.load %arg7[%c0, %c0_1] : memref<4x128xf32, #tpu.memory_space<vmem>>, vector<4x128xf32>
    %c0_2 = arith.constant 0 : index
    %c0_3 = arith.constant 0 : index
    %4 = vector.load %arg9[%c0_2, %c0_3] : memref<4x128xf32, #tpu.memory_space<vmem>>, vector<4x128xf32>
    %c0_4 = arith.constant 0 : index
    %c0_5 = arith.constant 0 : index
    %5 = vector.load %arg10[%c0_4, %c0_5] : memref<4x128xf32, #tpu.memory_space<vmem>>, vector<4x128xf32>
    %c0_6 = arith.constant 0 : index
    %c0_7 = arith.constant 0 : index
    %6 = vector.load %arg11[%c0_6, %c0_7] : memref<4x128xf32, #tpu.memory_space<vmem>>, vector<4x128xf32>
    %c0_8 = arith.constant 0 : index
    %c0_9 = arith.constant 0 : index
    %7 = vector.load %arg12[%c0_8, %c0_9] : memref<4x128xf32, #tpu.memory_space<vmem>>, vector<4x128xf32>
    %c0_10 = arith.constant 0 : index
    %c0_11 = arith.constant 0 : index
    %8 = vector.load %arg8[%c0_10, %c0_11] : memref<1x128xf32, #tpu.memory_space<vmem>>, vector<1x128xf32>
    %c0_12 = arith.constant 0 : index
    %c0_13 = arith.constant 0 : index
    %9 = vector.load %arg14[%c0_12, %c0_13] : memref<4x128xf32, #tpu.memory_space<vmem>>, vector<4x128xf32>
    %c0_i32_14 = arith.constant 0 : i32
    %c2_i32 = arith.constant 2 : i32
    %10 = arith.addi %c0_i32_14, %c2_i32 : i32
    %c1_i32 = arith.constant 1 : i32
    %11 = scf.for %arg15 = %c0_i32_14 to %10 step %c1_i32 iter_args(%arg16 = %9) -> (vector<4x128xf32>)  : i32 {
      %c8_i32 = arith.constant 8 : i32
      %13 = arith.muli %arg15, %c8_i32 : i32
      %14 = tpu.assume_multiple %13, 8 : i32
      %c0_18 = arith.constant 0 : index
      %15 = arith.index_cast %14 : i32 to index
      %c0_19 = arith.constant 0 : index
      %16 = vector.load %arg4[%c0_18, %15, %c0_19] : memref<1x16x128xf32, #tpu.memory_space<vmem>>, vector<1x8x128xf32>
      %17 = vector.shape_cast %16 : vector<1x8x128xf32> to vector<8x128xf32>
      %c0_20 = arith.constant 0 : index
      %18 = arith.index_cast %14 : i32 to index
      %c0_21 = arith.constant 0 : index
      %19 = vector.load %arg3[%c0_20, %18, %c0_21] : memref<1x16x128xf32, #tpu.memory_space<vmem>>, vector<1x8x128xf32>
      %20 = vector.shape_cast %19 : vector<1x8x128xf32> to vector<8x128xf32>
      %c0_22 = arith.constant 0 : index
      %21 = arith.index_cast %14 : i32 to index
      %c0_23 = arith.constant 0 : index
      %c0_24 = arith.constant 0 : index
      %22 = vector.load %arg5[%c0_22, %21, %c0_23, %c0_24] : memref<1x16x4x1xf32, #tpu.memory_space<vmem>>, vector<1x8x4x1xf32>
      %23 = vector.shape_cast %22 : vector<1x8x4x1xf32> to vector<8x4x1xf32>
      %c0_25 = arith.constant 0 : index
      %24 = arith.index_cast %14 : i32 to index
      %c0_26 = arith.constant 0 : index
      %c0_27 = arith.constant 0 : index
      %25 = vector.load %arg6[%c0_25, %24, %c0_26, %c0_27] : memref<1x16x4x1xf32, #tpu.memory_space<vmem>>, vector<1x8x4x1xf32>
      %26 = vector.shape_cast %25 : vector<1x8x4x1xf32> to vector<8x4x1xf32>
      %27 = vector.extract_strided_slice %17 {offsets = [0, 0], sizes = [1, 128], strides = [1, 1]} : vector<8x128xf32> to vector<1x128xf32>
      %28 = vector.extract_strided_slice %20 {offsets = [0, 0], sizes = [1, 128], strides = [1, 1]} : vector<8x128xf32> to vector<1x128xf32>
      %29 = vector.broadcast %27 : vector<1x128xf32> to vector<4x128xf32>
      %30 = arith.mulf %29, %3 : vector<4x128xf32>
      %31 = math.exp %30 : vector<4x128xf32>
      %32 = vector.extract_strided_slice %23 {offsets = [0, 0, 0], sizes = [1, 4, 1], strides = [1, 1, 1]} : vector<8x4x1xf32> to vector<1x4x1xf32>
      %33 = vector.shape_cast %32 : vector<1x4x1xf32> to vector<4x1xf32>
      %34 = vector.broadcast %33 : vector<4x1xf32> to vector<4x128xf32>
      %35 = arith.mulf %4, %34 : vector<4x128xf32>
      %36 = arith.addf %35, %5 : vector<4x128xf32>
      %37 = vector.extract_strided_slice %26 {offsets = [0, 0, 0], sizes = [1, 4, 1], strides = [1, 1, 1]} : vector<8x4x1xf32> to vector<1x4x1xf32>
      %38 = vector.shape_cast %37 : vector<1x4x1xf32> to vector<4x1xf32>
      %39 = vector.broadcast %38 : vector<4x1xf32> to vector<4x128xf32>
      %40 = arith.mulf %6, %39 : vector<4x128xf32>
      %41 = arith.addf %40, %7 : vector<4x128xf32>
      %42 = arith.mulf %31, %arg16 : vector<4x128xf32>
      %43 = arith.mulf %27, %28 : vector<1x128xf32>
      %44 = vector.broadcast %43 : vector<1x128xf32> to vector<4x128xf32>
      %45 = arith.mulf %44, %36 : vector<4x128xf32>
      %46 = arith.addf %42, %45 : vector<4x128xf32>
      %47 = arith.mulf %46, %41 : vector<4x128xf32>
      %cst = arith.constant dense<0.000000e+00> : vector<128xf32>
      %48 = vector.multi_reduction <add>, %47, %cst [0] : vector<4x128xf32> to vector<128xf32>
      %49 = vector.shape_cast %48 : vector<128xf32> to vector<1x128xf32>
      %50 = vector.extract_strided_slice %17 {offsets = [1, 0], sizes = [1, 128], strides = [1, 1]} : vector<8x128xf32> to vector<1x128xf32>
      %51 = vector.extract_strided_slice %20 {offsets = [1, 0], sizes = [1, 128], strides = [1, 1]} : vector<8x128xf32> to vector<1x128xf32>
      %52 = vector.broadcast %50 : vector<1x128xf32> to vector<4x128xf32>
      %53 = arith.mulf %52, %3 : vector<4x128xf32>
      %54 = math.exp %53 : vector<4x128xf32>
      %55 = vector.extract_strided_slice %23 {offsets = [1, 0, 0], sizes = [1, 4, 1], strides = [1, 1, 1]} : vector<8x4x1xf32> to vector<1x4x1xf32>
      %56 = vector.shape_cast %55 : vector<1x4x1xf32> to vector<4x1xf32>
      %57 = vector.broadcast %56 : vector<4x1xf32> to vector<4x128xf32>
      %58 = arith.mulf %4, %57 : vector<4x128xf32>
      %59 = arith.addf %58, %5 : vector<4x128xf32>
      %60 = vector.extract_strided_slice %26 {offsets = [1, 0, 0], sizes = [1, 4, 1], strides = [1, 1, 1]} : vector<8x4x1xf32> to vector<1x4x1xf32>
      %61 = vector.shape_cast %60 : vector<1x4x1xf32> to vector<4x1xf32>
      %62 = vector.broadcast %61 : vector<4x1xf32> to vector<4x128xf32>
      %63 = arith.mulf %6, %62 : vector<4x128xf32>
      %64 = arith.addf %63, %7 : vector<4x128xf32>
      %65 = arith.mulf %54, %46 : vector<4x128xf32>
      %66 = arith.mulf %50, %51 : vector<1x128xf32>
      %67 = vector.broadcast %66 : vector<1x128xf32> to vector<4x128xf32>
      %68 = arith.mulf %67, %59 : vector<4x128xf32>
      %69 = arith.addf %65, %68 : vector<4x128xf32>
      %70 = arith.mulf %69, %64 : vector<4x128xf32>
      %cst_28 = arith.constant dense<0.000000e+00> : vector<128xf32>
      %71 = vector.multi_reduction <add>, %70, %cst_28 [0] : vector<4x128xf32> to vector<128xf32>
      %72 = vector.shape_cast %71 : vector<128xf32> to vector<1x128xf32>
      %73 = vector.extract_strided_slice %17 {offsets = [2, 0], sizes = [1, 128], strides = [1, 1]} : vector<8x128xf32> to vector<1x128xf32>
      %74 = vector.extract_strided_slice %20 {offsets = [2, 0], sizes = [1, 128], strides = [1, 1]} : vector<8x128xf32> to vector<1x128xf32>
      %75 = vector.broadcast %73 : vector<1x128xf32> to vector<4x128xf32>
      %76 = arith.mulf %75, %3 : vector<4x128xf32>
      %77 = math.exp %76 : vector<4x128xf32>
      %78 = vector.extract_strided_slice %23 {offsets = [2, 0, 0], sizes = [1, 4, 1], strides = [1, 1, 1]} : vector<8x4x1xf32> to vector<1x4x1xf32>
      %79 = vector.shape_cast %78 : vector<1x4x1xf32> to vector<4x1xf32>
      %80 = vector.broadcast %79 : vector<4x1xf32> to vector<4x128xf32>
      %81 = arith.mulf %4, %80 : vector<4x128xf32>
      %82 = arith.addf %81, %5 : vector<4x128xf32>
      %83 = vector.extract_strided_slice %26 {offsets = [2, 0, 0], sizes = [1, 4, 1], strides = [1, 1, 1]} : vector<8x4x1xf32> to vector<1x4x1xf32>
      %84 = vector.shape_cast %83 : vector<1x4x1xf32> to vector<4x1xf32>
      %85 = vector.broadcast %84 : vector<4x1xf32> to vector<4x128xf32>
      %86 = arith.mulf %6, %85 : vector<4x128xf32>
      %87 = arith.addf %86, %7 : vector<4x128xf32>
      %88 = arith.mulf %77, %69 : vector<4x128xf32>
      %89 = arith.mulf %73, %74 : vector<1x128xf32>
      %90 = vector.broadcast %89 : vector<1x128xf32> to vector<4x128xf32>
      %91 = arith.mulf %90, %82 : vector<4x128xf32>
      %92 = arith.addf %88, %91 : vector<4x128xf32>
      %93 = arith.mulf %92, %87 : vector<4x128xf32>
      %cst_29 = arith.constant dense<0.000000e+00> : vector<128xf32>
      %94 = vector.multi_reduction <add>, %93, %cst_29 [0] : vector<4x128xf32> to vector<128xf32>
      %95 = vector.shape_cast %94 : vector<128xf32> to vector<1x128xf32>
      %96 = vector.extract_strided_slice %17 {offsets = [3, 0], sizes = [1, 128], strides = [1, 1]} : vector<8x128xf32> to vector<1x128xf32>
      %97 = vector.extract_strided_slice %20 {offsets = [3, 0], sizes = [1, 128], strides = [1, 1]} : vector<8x128xf32> to vector<1x128xf32>
      %98 = vector.broadcast %96 : vector<1x128xf32> to vector<4x128xf32>
      %99 = arith.mulf %98, %3 : vector<4x128xf32>
      %100 = math.exp %99 : vector<4x128xf32>
      %101 = vector.extract_strided_slice %23 {offsets = [3, 0, 0], sizes = [1, 4, 1], strides = [1, 1, 1]} : vector<8x4x1xf32> to vector<1x4x1xf32>
      %102 = vector.shape_cast %101 : vector<1x4x1xf32> to vector<4x1xf32>
      %103 = vector.broadcast %102 : vector<4x1xf32> to vector<4x128xf32>
      %104 = arith.mulf %4, %103 : vector<4x128xf32>
      %105 = arith.addf %104, %5 : vector<4x128xf32>
      %106 = vector.extract_strided_slice %26 {offsets = [3, 0, 0], sizes = [1, 4, 1], strides = [1, 1, 1]} : vector<8x4x1xf32> to vector<1x4x1xf32>
      %107 = vector.shape_cast %106 : vector<1x4x1xf32> to vector<4x1xf32>
      %108 = vector.broadcast %107 : vector<4x1xf32> to vector<4x128xf32>
      %109 = arith.mulf %6, %108 : vector<4x128xf32>
      %110 = arith.addf %109, %7 : vector<4x128xf32>
      %111 = arith.mulf %100, %92 : vector<4x128xf32>
      %112 = arith.mulf %96, %97 : vector<1x128xf32>
      %113 = vector.broadcast %112 : vector<1x128xf32> to vector<4x128xf32>
      %114 = arith.mulf %113, %105 : vector<4x128xf32>
      %115 = arith.addf %111, %114 : vector<4x128xf32>
      %116 = arith.mulf %115, %110 : vector<4x128xf32>
      %cst_30 = arith.constant dense<0.000000e+00> : vector<128xf32>
      %117 = vector.multi_reduction <add>, %116, %cst_30 [0] : vector<4x128xf32> to vector<128xf32>
      %118 = vector.shape_cast %117 : vector<128xf32> to vector<1x128xf32>
      %119 = vector.extract_strided_slice %17 {offsets = [4, 0], sizes = [1, 128], strides = [1, 1]} : vector<8x128xf32> to vector<1x128xf32>
      %120 = vector.extract_strided_slice %20 {offsets = [4, 0], sizes = [1, 128], strides = [1, 1]} : vector<8x128xf32> to vector<1x128xf32>
      %121 = vector.broadcast %119 : vector<1x128xf32> to vector<4x128xf32>
      %122 = arith.mulf %121, %3 : vector<4x128xf32>
      %123 = math.exp %122 : vector<4x128xf32>
      %124 = vector.extract_strided_slice %23 {offsets = [4, 0, 0], sizes = [1, 4, 1], strides = [1, 1, 1]} : vector<8x4x1xf32> to vector<1x4x1xf32>
      %125 = vector.shape_cast %124 : vector<1x4x1xf32> to vector<4x1xf32>
      %126 = vector.broadcast %125 : vector<4x1xf32> to vector<4x128xf32>
      %127 = arith.mulf %4, %126 : vector<4x128xf32>
      %128 = arith.addf %127, %5 : vector<4x128xf32>
      %129 = vector.extract_strided_slice %26 {offsets = [4, 0, 0], sizes = [1, 4, 1], strides = [1, 1, 1]} : vector<8x4x1xf32> to vector<1x4x1xf32>
      %130 = vector.shape_cast %129 : vector<1x4x1xf32> to vector<4x1xf32>
      %131 = vector.broadcast %130 : vector<4x1xf32> to vector<4x128xf32>
      %132 = arith.mulf %6, %131 : vector<4x128xf32>
      %133 = arith.addf %132, %7 : vector<4x128xf32>
      %134 = arith.mulf %123, %115 : vector<4x128xf32>
      %135 = arith.mulf %119, %120 : vector<1x128xf32>
      %136 = vector.broadcast %135 : vector<1x128xf32> to vector<4x128xf32>
      %137 = arith.mulf %136, %128 : vector<4x128xf32>
      %138 = arith.addf %134, %137 : vector<4x128xf32>
      %139 = arith.mulf %138, %133 : vector<4x128xf32>
      %cst_31 = arith.constant dense<0.000000e+00> : vector<128xf32>
      %140 = vector.multi_reduction <add>, %139, %cst_31 [0] : vector<4x128xf32> to vector<128xf32>
      %141 = vector.shape_cast %140 : vector<128xf32> to vector<1x128xf32>
      %142 = vector.extract_strided_slice %17 {offsets = [5, 0], sizes = [1, 128], strides = [1, 1]} : vector<8x128xf32> to vector<1x128xf32>
      %143 = vector.extract_strided_slice %20 {offsets = [5, 0], sizes = [1, 128], strides = [1, 1]} : vector<8x128xf32> to vector<1x128xf32>
      %144 = vector.broadcast %142 : vector<1x128xf32> to vector<4x128xf32>
      %145 = arith.mulf %144, %3 : vector<4x128xf32>
      %146 = math.exp %145 : vector<4x128xf32>
      %147 = vector.extract_strided_slice %23 {offsets = [5, 0, 0], sizes = [1, 4, 1], strides = [1, 1, 1]} : vector<8x4x1xf32> to vector<1x4x1xf32>
      %148 = vector.shape_cast %147 : vector<1x4x1xf32> to vector<4x1xf32>
      %149 = vector.broadcast %148 : vector<4x1xf32> to vector<4x128xf32>
      %150 = arith.mulf %4, %149 : vector<4x128xf32>
      %151 = arith.addf %150, %5 : vector<4x128xf32>
      %152 = vector.extract_strided_slice %26 {offsets = [5, 0, 0], sizes = [1, 4, 1], strides = [1, 1, 1]} : vector<8x4x1xf32> to vector<1x4x1xf32>
      %153 = vector.shape_cast %152 : vector<1x4x1xf32> to vector<4x1xf32>
      %154 = vector.broadcast %153 : vector<4x1xf32> to vector<4x128xf32>
      %155 = arith.mulf %6, %154 : vector<4x128xf32>
      %156 = arith.addf %155, %7 : vector<4x128xf32>
      %157 = arith.mulf %146, %138 : vector<4x128xf32>
      %158 = arith.mulf %142, %143 : vector<1x128xf32>
      %159 = vector.broadcast %158 : vector<1x128xf32> to vector<4x128xf32>
      %160 = arith.mulf %159, %151 : vector<4x128xf32>
      %161 = arith.addf %157, %160 : vector<4x128xf32>
      %162 = arith.mulf %161, %156 : vector<4x128xf32>
      %cst_32 = arith.constant dense<0.000000e+00> : vector<128xf32>
      %163 = vector.multi_reduction <add>, %162, %cst_32 [0] : vector<4x128xf32> to vector<128xf32>
      %164 = vector.shape_cast %163 : vector<128xf32> to vector<1x128xf32>
      %165 = vector.extract_strided_slice %17 {offsets = [6, 0], sizes = [1, 128], strides = [1, 1]} : vector<8x128xf32> to vector<1x128xf32>
      %166 = vector.extract_strided_slice %20 {offsets = [6, 0], sizes = [1, 128], strides = [1, 1]} : vector<8x128xf32> to vector<1x128xf32>
      %167 = vector.broadcast %165 : vector<1x128xf32> to vector<4x128xf32>
      %168 = arith.mulf %167, %3 : vector<4x128xf32>
      %169 = math.exp %168 : vector<4x128xf32>
      %170 = vector.extract_strided_slice %23 {offsets = [6, 0, 0], sizes = [1, 4, 1], strides = [1, 1, 1]} : vector<8x4x1xf32> to vector<1x4x1xf32>
      %171 = vector.shape_cast %170 : vector<1x4x1xf32> to vector<4x1xf32>
      %172 = vector.broadcast %171 : vector<4x1xf32> to vector<4x128xf32>
      %173 = arith.mulf %4, %172 : vector<4x128xf32>
      %174 = arith.addf %173, %5 : vector<4x128xf32>
      %175 = vector.extract_strided_slice %26 {offsets = [6, 0, 0], sizes = [1, 4, 1], strides = [1, 1, 1]} : vector<8x4x1xf32> to vector<1x4x1xf32>
      %176 = vector.shape_cast %175 : vector<1x4x1xf32> to vector<4x1xf32>
      %177 = vector.broadcast %176 : vector<4x1xf32> to vector<4x128xf32>
      %178 = arith.mulf %6, %177 : vector<4x128xf32>
      %179 = arith.addf %178, %7 : vector<4x128xf32>
      %180 = arith.mulf %169, %161 : vector<4x128xf32>
      %181 = arith.mulf %165, %166 : vector<1x128xf32>
      %182 = vector.broadcast %181 : vector<1x128xf32> to vector<4x128xf32>
      %183 = arith.mulf %182, %174 : vector<4x128xf32>
      %184 = arith.addf %180, %183 : vector<4x128xf32>
      %185 = arith.mulf %184, %179 : vector<4x128xf32>
      %cst_33 = arith.constant dense<0.000000e+00> : vector<128xf32>
      %186 = vector.multi_reduction <add>, %185, %cst_33 [0] : vector<4x128xf32> to vector<128xf32>
      %187 = vector.shape_cast %186 : vector<128xf32> to vector<1x128xf32>
      %188 = vector.extract_strided_slice %17 {offsets = [7, 0], sizes = [1, 128], strides = [1, 1]} : vector<8x128xf32> to vector<1x128xf32>
      %189 = vector.extract_strided_slice %20 {offsets = [7, 0], sizes = [1, 128], strides = [1, 1]} : vector<8x128xf32> to vector<1x128xf32>
      %190 = vector.broadcast %188 : vector<1x128xf32> to vector<4x128xf32>
      %191 = arith.mulf %190, %3 : vector<4x128xf32>
      %192 = math.exp %191 : vector<4x128xf32>
      %193 = vector.extract_strided_slice %23 {offsets = [7, 0, 0], sizes = [1, 4, 1], strides = [1, 1, 1]} : vector<8x4x1xf32> to vector<1x4x1xf32>
      %194 = vector.shape_cast %193 : vector<1x4x1xf32> to vector<4x1xf32>
      %195 = vector.broadcast %194 : vector<4x1xf32> to vector<4x128xf32>
      %196 = arith.mulf %4, %195 : vector<4x128xf32>
      %197 = arith.addf %196, %5 : vector<4x128xf32>
      %198 = vector.extract_strided_slice %26 {offsets = [7, 0, 0], sizes = [1, 4, 1], strides = [1, 1, 1]} : vector<8x4x1xf32> to vector<1x4x1xf32>
      %199 = vector.shape_cast %198 : vector<1x4x1xf32> to vector<4x1xf32>
      %200 = vector.broadcast %199 : vector<4x1xf32> to vector<4x128xf32>
      %201 = arith.mulf %6, %200 : vector<4x128xf32>
      %202 = arith.addf %201, %7 : vector<4x128xf32>
      %203 = arith.mulf %192, %184 : vector<4x128xf32>
      %204 = arith.mulf %188, %189 : vector<1x128xf32>
      %205 = vector.broadcast %204 : vector<1x128xf32> to vector<4x128xf32>
      %206 = arith.mulf %205, %197 : vector<4x128xf32>
      %207 = arith.addf %203, %206 : vector<4x128xf32>
      %208 = arith.mulf %207, %202 : vector<4x128xf32>
      %cst_34 = arith.constant dense<0.000000e+00> : vector<128xf32>
      %209 = vector.multi_reduction <add>, %208, %cst_34 [0] : vector<4x128xf32> to vector<128xf32>
      %210 = vector.shape_cast %209 : vector<128xf32> to vector<1x128xf32>
      %211 = tpu.concatenate %49, %72, %95, %118, %141, %164, %187, %210 in 0 : vector<1x128xf32>, vector<1x128xf32>, vector<1x128xf32>, vector<1x128xf32>, vector<1x128xf32>, vector<1x128xf32>, vector<1x128xf32>, vector<1x128xf32> -> vector<8x128xf32>
      %212 = vector.broadcast %8 : vector<1x128xf32> to vector<8x128xf32>
      %213 = arith.mulf %20, %212 : vector<8x128xf32>
      %214 = arith.addf %211, %213 : vector<8x128xf32>
      %c0_35 = arith.constant 0 : index
      %215 = arith.index_cast %14 : i32 to index
      %c0_36 = arith.constant 0 : index
      %216 = vector.load %arg13[%c0_35, %215, %c0_36] : memref<1x16x128xf32, #tpu.memory_space<vmem>>, vector<1x8x128xf32>
      %217 = vector.shape_cast %216 : vector<1x8x128xf32> to vector<8x128xf32>
      %218 = vector.shape_cast %214 : vector<8x128xf32> to vector<1x8x128xf32>
      tpu.vector_store %arg13[%c0_35, %215, %c0_36], %218 {strides = array<i32>} : memref<1x16x128xf32, #tpu.memory_space<vmem>>, vector<1x8x128xf32>,
      scf.yield %207 : vector<4x128xf32>
    }
    %c2_i32_15 = arith.constant 2 : i32
    %c0_16 = arith.constant 0 : index
    %c0_17 = arith.constant 0 : index
    %12 = vector.load %arg14[%c0_16, %c0_17] : memref<4x128xf32, #tpu.memory_space<vmem>>, vector<4x128xf32>
    tpu.vector_store %arg14[%c0_16, %c0_17], %11 {strides = array<i32>} : memref<4x128xf32, #tpu.memory_space<vmem>>, vector<4x128xf32>,
    return
  }
  func.func @transform_0(%arg0: i32, %arg1: i32, %arg2: i32) -> (i32, i32, i32) {
    %c0_i32 = arith.constant 0 : i32
    return %arg0, %arg2, %arg1 : i32, i32, i32
  }
  func.func @transform_1(%arg0: i32, %arg1: i32, %arg2: i32) -> (i32, i32, i32) {
    %c0_i32 = arith.constant 0 : i32
    return %arg0, %arg2, %arg1 : i32, i32, i32
  }
  func.func @transform_2(%arg0: i32, %arg1: i32, %arg2: i32) -> (i32, i32, i32, i32) {
    %c0_i32 = arith.constant 0 : i32
    %c0_i32_0 = arith.constant 0 : i32
    %c0_i32_1 = arith.constant 0 : i32
    return %arg0, %arg2, %c0_i32, %c0_i32_0 : i32, i32, i32, i32
  }
  func.func @transform_3(%arg0: i32, %arg1: i32, %arg2: i32) -> (i32, i32, i32, i32) {
    %c0_i32 = arith.constant 0 : i32
    %c0_i32_0 = arith.constant 0 : i32
    %c0_i32_1 = arith.constant 0 : i32
    return %arg0, %arg2, %c0_i32, %c0_i32_0 : i32, i32, i32, i32
  }
  func.func @transform_4(%arg0: i32, %arg1: i32, %arg2: i32) -> (i32, i32) {
    %c0_i32 = arith.constant 0 : i32
    %c0_i32_0 = arith.constant 0 : i32
    return %c0_i32, %arg1 : i32, i32
  }
  func.func @transform_5(%arg0: i32, %arg1: i32, %arg2: i32) -> (i32, i32) {
    %c0_i32 = arith.constant 0 : i32
    %c0_i32_0 = arith.constant 0 : i32
    return %c0_i32, %arg1 : i32, i32
  }
  func.func @transform_6(%arg0: i32, %arg1: i32, %arg2: i32) -> (i32, i32) {
    %c0_i32 = arith.constant 0 : i32
    %c0_i32_0 = arith.constant 0 : i32
    return %c0_i32, %arg1 : i32, i32
  }
  func.func @transform_7(%arg0: i32, %arg1: i32, %arg2: i32) -> (i32, i32) {
    %c0_i32 = arith.constant 0 : i32
    %c0_i32_0 = arith.constant 0 : i32
    return %c0_i32, %arg1 : i32, i32
  }
  func.func @transform_8(%arg0: i32, %arg1: i32, %arg2: i32) -> (i32, i32) {
    %c0_i32 = arith.constant 0 : i32
    %c0_i32_0 = arith.constant 0 : i32
    return %c0_i32, %arg1 : i32, i32
  }
  func.func @transform_9(%arg0: i32, %arg1: i32, %arg2: i32) -> (i32, i32) {
    %c0_i32 = arith.constant 0 : i32
    %c0_i32_0 = arith.constant 0 : i32
    return %c0_i32, %arg1 : i32, i32
  }
  func.func @transform_10(%arg0: i32, %arg1: i32, %arg2: i32) -> (i32, i32, i32) {
    %c0_i32 = arith.constant 0 : i32
    return %arg0, %arg2, %arg1 : i32, i32, i32
  }
}

</mosaic_0001>

<bundles_post_ra>
// kernel: tpu_custom_call.1
= control target key start
LH: loop header
LB: loop body
LE: loop exit
PB: predicated region body
PF: predicated region fallthrough
CT: control target
= control target key end

     0   :  { %s1999_s0 = inlined_call_operand.vmem [shape: f32[2,32,256], index: 0, kind: input, shape index: {}]   ;;  %s2000_s1 = inlined_call_operand.vmem [shape: f32[2,32,256], index: 1, kind: input, shape index: {}]   ;;  %s2001_s2 = inlined_call_operand.vmem [shape: f32[2,32,4,1], index: 2, kind: input, shape index: {}]   ;;  %s2002_s3 = inlined_call_operand.vmem [shape: f32[2,32,4,1], index: 3, kind: input, shape index: {}]   ;;  %s2003_s4 = inlined_call_operand.vmem [shape: f32[4,256], index: 4, kind: input, shape index: {}]   ;;  %s2004_s5 = inlined_call_operand.vmem [shape: f32[1,256], index: 5, kind: input, shape index: {}]   ;;  %s2005_s6 = inlined_call_operand.vmem [shape: f32[4,256], index: 6, kind: input, shape index: {}]   ;;  %s2006_s7 = inlined_call_operand.vmem [shape: f32[4,256], index: 7, kind: input, shape index: {}]   ;;  %s2007_s8 = inlined_call_operand.vmem [shape: f32[4,256], index: 8, kind: input, shape index: {}]   ;;  %s2008_s9 = inlined_call_operand.vmem [shape: f32[4,256], index: 9, kind: input, shape index: {}]   ;;  %s2009_s10 = inlined_call_operand.hbm [shape: f32[2,32,256], index: 10, kind: output, shape index: {}]  }
   0x1   :  { %2025 = sst [smem:[#allocation20_spill]] %s1999_s0 }
   0x2   :  { %2026 = sst [smem:[#allocation21_spill]] %s2000_s1 }
   0x3   :  { %2027 = sst [smem:[#allocation22_spill]] %s2001_s2 }
   0x4   :  { %2028 = sst [smem:[#allocation23_spill]] %s2002_s3 }
   0x5   :  { %2029 = sst [smem:[#allocation24_spill]] %s2004_s5 }
   0x6   :  { %2030 = sst [smem:[#allocation25_spill]] %s2006_s7 }
   0x7   :  { %2031 = sst [smem:[#allocation26_spill]] %s2007_s8 }
   0x8   :  { %2032 = sst [smem:[#allocation27_spill]] %s2008_s9 }
   0x9   :  { %2033 = sst [smem:[#allocation28_spill]] %s2009_s10 }
   0xa   :  { %15 = vsyncpa [#allocation6], 0 }
   0xb   :  { %17 = vsyncpa [#allocation6 + $0x1], 0  ;;  %s1641_s13 = smov 0   ;;  %s1643_s14 = smov 0  }
   0xc   :  { %s1645_s15 = smov 0   ;;  %s1647_s16 = smov 0  }
   0xd   :  { %s1649_s17 = smov 0   ;;  %s1651_s18 = smov 0  }
   0xe   :  { %s1653_s19 = smov 0   ;;  %s1655_s20 = smov 0  }
   0xf   :  { %s1657_s21 = smov 0   ;;  %s1659_s22 = smov 0  }
  0x10 LB: > { %2034 = sst [smem:[#allocation8_spill]] %s1534_s13  ;;  %s35_s23 = sadd.s32 1, %s1558_s19  ;;  %s1570_s22 = sphi %s1659_s22, %s23_s22   ;;  %s1566_s21 = sphi %s1657_s21, %s2072_s21   ;;  %s1562_s20 = sphi %s1655_s20, %s2071_s20   ;;  %s1558_s19 = sphi %s1653_s19, %s2070_s19   ;;  %s1554_s18 = sphi %s1651_s18, %s2069_s18   ;;  %s1550_s17 = sphi %s1649_s17, %s2068_s17   ;;  %s1546_s16 = sphi %s1647_s16, %s2067_s16   ;;  %s1542_s15 = sphi %s1645_s15, %s2066_s15   ;;  %s1538_s14 = sphi %s1643_s14, %s2074_s14   ;;  %s1534_s13 = sphi %s1641_s13, %s2073_s13  }
  0x11   : > { %2035 = sst [smem:[#allocation9_spill]] %s1542_s15  ;;  %p36_p0 = scmp.ge.s32.totalorder %s35_s23, 2 }
  0x12   : > { %2036 = sst [smem:[#allocation10_spill]] %s1558_s19  ;;  %s38_s24 = sadd.s32 1, %s1562_s20 }
  0x13   : > { %2037 = sst [smem:[#allocation11_spill]] %s1562_s20  ;;  %s1282_s25 = sadd.s32 4294967295, %s1570_s22  }
  0x14   : > { %2038 = sst [smem:[#allocation12_spill]] %s1566_s21  ;;  %p60_p1 = scmp.ne.s32.totalorder %s1542_s15, %s1538_s14 }
  0x15   : > { %2039 = sst [smem:[#allocation13_spill]] %s1570_s22  ;;  %s2076_s23 = smov (%p36_p0, %s35_s23), 0 }
  0x16   : > { %2040 = sst [smem:[#allocation14_spill]] %s2076_s23  ;;  %s2078_s24 = smov (!%p36_p0, %s38_s24), %s1562_s20 }
  0x17   : > { %s42_s26 = sadd.s32 1, %s1566_s21  ;;  %p61_p2 = scmp.eq.s32.totalorder %s1570_s22, 0 }
  0x18   : > { %p40_p3 = scmp.ge.s32.totalorder %s2078_s24, 2  ;;  %p336_p4 = scmp.eq.s32.totalorder %s1282_s25, 7 }
  0x19   : > { %s1283_s27 = sadd.s32 4294967294, %s1570_s22   ;;  %p1702_p5 = por %p61_p2, %p60_p1 }
  0x1a   : > { %s2080_s24 = smov (%p40_p3, %s2078_s24), 0  ;;  %s2082_s26 = smov (!%p40_p3, %s42_s26), %s1566_s21 }
  0x1b   : > { %2042 = sst [smem:[#allocation15_spill]] %s2080_s24  ;;  %p1709_p6 = por %p336_p4, %p60_p1 }
  0x1c   : > { %p341_p7 = scmp.ne.s32.totalorder %s1538_s14, %s1534_s13  ;;  %p44_p8 = scmp.ge.s32.totalorder %s2082_s26, 2 }
  0x1d   : > { %s2043_s29 = scalar_select %p1709_p6, 1, 0 }
  0x1e   : > { %p342_p9 = scmp.eq.s32.totalorder %s1283_s27, 7  ;;  %s47_s30 = ssub.s32 %s1558_s19, %s2076_s23 }
  0x1f   : > { %2044 = sst [smem:[#allocation16_spill]] %s2043_s29  ;;  %s2084_s26 = smov (%p44_p8, %s2082_s26), 0 }
  0x20   : > { %2045 = sst [smem:[#allocation17_spill]] %s2084_s26  ;;  %s49_s11 = ssub.s32 %s1562_s20, %s2080_s24 }
  0x21   : > { %p1721_p10 = por %p342_p9, %p341_p7  ;;  %s46_s25 = ssub.s32 %s1566_s21, %s2084_s26 }
  0x22   : > { %s48_s10 = sor.u32 %s47_s30, %s46_s25  ;;  %s53_s8 = sadd.s32 1, %s1542_s15 }
  0x23   : > { %s2046_s12 = scalar_select %p1721_p10, 1, 0 }
  0x24   : > { %s50_s9 = sor.u32 %s49_s11, %s48_s10  ;;  %p1285_p12 = scmp.ge.s32.totalorder %s1570_s22, 8 }
  0x25   : > { %2047 = sst [smem:[#allocation18_spill]] %s2046_s12  ;;  %p51_p11 = scmp.eq.s32.totalorder %s50_s9, 0 }
  0x26   : > { %358 = sbr.rel (%p1285_p12) target bundleno = 69 (0x45), region = 16 }
  0x27   : > { %s1729_s7 = scalar_select %p51_p11, %s1542_s15, %s53_s8  }
  0x29   : > { %2048 = sst [smem:[#allocation19_spill]] %s1729_s7 }
  0x2d   : > { %361 = sbr.rel (!%p1702_p5) target bundleno = 57 (0x39), region = 20  ;;  %s363_s27 = sand.u32 (%p1702_p5), 1, %s1542_s15  }
  0x2e   : > { %s1322_s24 = sshll.u32 (%p1702_p5), %s1558_s19, 2  ;;  %s1286_s23 = sshll.u32 (%p1702_p5), %s363_s27, 4 }
  0x2f   : > { %s368_s26 = sadd.s32 (%p1702_p5), %s1562_s20, %s1322_s24  ;;  %s1289_s30 = sshll.u32 (%p1702_p5), %s1566_s21, 3 }
  0x30   : > { %s370_s10 = sadd.s32 (%p1702_p5), %s1289_s30, %s368_s26  ;;  %s2049_s0 = sld [smem:[#allocation20_spill]] (%p1702_p5) }
  0x31   : > { %s1290_s11 = sshll.u32 (%p1702_p5), %s370_s10, 3  ;;  %s365_s7 = scalar_lea.vmem (%p1702_p5), [#allocation3], %s1286_s23 }
  0x36   : > { %s372_s25 = scalar_lea.vmem %s2049_s0, %s1290_s11 }
  0x37   : > { %v402_v0 = vld [vmem:[%s372_s25] sm:$0xff]  ;;  %v404_v1 = vld [vmem:[%s372_s25 + $0x10] sm:$0xff] }
  0x38   : > { %403 = vst [vmem:[%s365_s7] sm:$0xff] %v402_v0  ;;  %405 = vst [vmem:[%s365_s7 + $0x8] sm:$0xff] %v404_v1 }
  0x39 PF: > { %411 = sbr.rel (!%p1702_p5) target bundleno = 69 (0x45), region = 58  ;;  %s413_s24 = sand.u32 (%p1702_p5), 1, %s1542_s15  }
  0x3a   : > { %s1323_s26 = sshll.u32 (%p1702_p5), %s1558_s19, 2  ;;  %s1291_s27 = sshll.u32 (%p1702_p5), %s413_s24, 4 }
  0x3b   : > { %s418_s30 = sadd.s32 (%p1702_p5), %s1562_s20, %s1323_s26  ;;  %s1294_s10 = sshll.u32 (%p1702_p5), %s1566_s21, 3 }
  0x3c   : > { %s420_s9 = sadd.s32 (%p1702_p5), %s1294_s10, %s418_s30  ;;  %s2050_s1 = sld [smem:[#allocation21_spill]] (%p1702_p5) }
  0x3d   : > { %s1295_s11 = sshll.u32 (%p1702_p5), %s420_s9, 3  ;;  %s415_s7 = scalar_lea.vmem (%p1702_p5), [#allocation4], %s1291_s27 }
  0x42   : > { %s422_s23 = scalar_lea.vmem %s2050_s1, %s1295_s11 }
  0x43   : > { %v452_v2 = vld [vmem:[%s422_s23] sm:$0xff]  ;;  %v454_v3 = vld [vmem:[%s422_s23 + $0x10] sm:$0xff] }
  0x44   : > { %453 = vst [vmem:[%s415_s7] sm:$0xff] %v452_v2  ;;  %455 = vst [vmem:[%s415_s7 + $0x8] sm:$0xff] %v454_v3 }
  0x45 PF: > { %p1296_p13 = scmp.ge.s32.totalorder %s1570_s22, 1  ;;  %p527_p0 = scmp.lt.s32.totalorder %s1570_s22, 9 }
  0x47   : > { %p528_p1 = pnand %p1296_p13, %p527_p0 }
  0x48   : > { %s2014_s28 = sand.u32 (!%p528_p1), 1, %s1538_s14   ;;  %s1300_s24 = sshll.u32 (!%p528_p1), %s1546_s16, 4 }
  0x49   : > { %531 = sbr.rel (%p528_p1) target bundleno = 302 (0x12e), region = 128  ;;  %s1756_s26 = sshll.u32 (!%p528_p1), %s2014_s28, 4 }
  0x4a   : > { %p626_p2 = scmp.lt.s32.totalorder (!%p528_p1), %s1554_s18, 1  ;;  %p628_p3 = scmp.lt.s32.totalorder (!%p528_p1), %s1300_s24, 31 }
  0x4b   : > { %p645_p4 = scmp.lt.s32.totalorder (!%p528_p1), %s1550_s17, 1  ;;  %s2051_s2 = sld [smem:[#allocation22_spill]] (!%p528_p1) }
  0x4c   : > { %s2052_s3 = sld [smem:[#allocation23_spill]] (!%p528_p1)  ;;  %s2053_s5 = sld [smem:[#allocation24_spill]] (!%p528_p1) }
  0x4d   : > { %s2054_s12 = sld [smem:[#allocation25_spill]] (!%p528_p1)  ;;  %s2056_s20 = sld [smem:[#allocation27_spill]] (!%p528_p1) }
  0x4e   : > { %s536_s21 = scalar_lea.vmem (!%p528_p1), [#allocation3], %s1756_s26  ;;  %s622_s15 = scalar_lea.vmem (!%p528_p1), [#allocation5], %s1756_s26 }
  0x4f   : > { %p1311_p5 = scmp.ne.s32.totalorder (!%p528_p1), %s1546_s16, 0 }
  0x50   : > { %s627_s27 = scalar_select %p626_p2, %s1554_s18, 1 }
  0x51   : > { %s2086_s24 = smov (!%p628_p3, %s1300_s24), 31  ;;  %v1580_v4 = vmov (!%p1311_p5), 0.0  }
  0x52   : > { %s1301_s30 = sshll.u32 %s627_s27, 5  ;;  %673 = vst [vmem:[#allocation2] sm:$0xf] (!%p1311_p5), %v1580_v4 }
  0x53   : > { %s631_s10 = sadd.s32 %s1301_s30, %s2086_s24 }
  0x54   : > { %s1302_s9 = sshll.u32 %s631_s10, 2 }
  0x55   : > { %s1764_s25 = scalar_lea.vmem %s2051_s2, %s1302_s9  ;;  %s1769_s28 = scalar_lea.vmem %s2052_s3, %s1302_s9 }
  0x56   : > { %s646_s0 = scalar_select %p645_p4, %s1550_s17, 1 }
  0x57   : > { %s2055_s3 = sld [smem:[#allocation26_spill]]  ;;  %672 = sbr.rel (%p1311_p5) target bundleno = 94 (0x5e), region = 140 }
  0x58   : > { %s1306_s1 = sshll.u32 %s646_s0, 2  ;;  %s651_s27 = scalar_lea.vmem %s2053_s5, %s646_s0 }
  0x59   : > { %s648_s24 = scalar_lea.vmem %s2003_s4, %s1306_s1  ;;  %s655_s11 = scalar_lea.vmem %s2005_s6, %s1306_s1 }
  0x5a   : > { %s659_s23 = scalar_lea.vmem %s2054_s12, %s1306_s1  ;;  %s667_s0 = scalar_lea.vmem %s2056_s20, %s1306_s1 }
  0x5b   : > { %s543_s5 = scalar_lea.vmem [#allocation4], %s1756_s26 }
  0x5d   : > { %s663_s13 = scalar_lea.vmem %s2055_s3, %s1306_s1 }
  0x5e PF: > { %v1794_v5 = vld [vmem:[%s648_s24] sm:$0xf]  ;;  %s1808_s1 = smov 0  }
  0x5f   : > { %v1796_v6 = vld [vmem:[%s655_s11] sm:$0xf] }
  0x60   : > { %v1798_v7 = vld [vmem:[%s659_s23] sm:$0xf] }
  0x61   : > { %v1800_v8 = vld [vmem:[%s663_s13] sm:$0xf] }
  0x62   : > { %v1802_v9 = vld [vmem:[%s667_s0] sm:$0xf] }
  0x63   : > { %v1804_v10 = vld [vmem:[%s651_s27] ss:$0 sm:$0xff] }
  0x64   : > { %v680_v11 = vld [vmem:[#allocation2] sm:$0xf]  }
  0x65 LB: >> { %v1581_v12 = vmov 0   ;;  %s1324_s2 = sshll.u32 %s1578_s1, 5  ;;  %v712_v29 = vlaneseq  ;;  %s1820_s19 = sshll.u32 %s1578_s1, 3  ;;  %vm742_vm0 = vcmask 1043456   ;;  %vm1002_vm1 = vcmask 1040384   ;;  %s1578_s1 = sphi %s1808_s1, %s686_s1   ;;  %v1574_v11 = vphi %v680_v11, %v2057_v11  }
  0x66   : >> { %1435 = vset.pattern.permute.xlu1 %v1581_v12  ;;  %1434 = vset.pattern.permute.xlu0 %v1581_v12  ;;  %s694_s3 = scalar_lea.vmem %s1764_s25, %s1324_s2  ;;  %s703_s13 = scalar_lea.vmem %s1769_s28, %s1324_s2  ;;  %vm1004_vm2 = vcmask 1041408   ;;  %vm1006_vm3 = vcmask 1042432   ;;  %vm1009_vm4 = vcmask 1044480   ;;  %vm1011_vm5 = vcmask 1045504  }
  0x67   : >> { %v697_v13 = vld [vmem:[%s694_s3 + $0x8] sm:$0xf]  ;;  %v695_v14 = vld [vmem:[%s694_s3] sm:$0xf]  ;;  %v698_v15 = vld [vmem:[%s694_s3 + $0xc] sm:$0xf]  ;;  %s689_s22 = scalar_lea.vmem %s543_s5, %s1820_s19 [#allocation4]  ;;  %s691_s29 = scalar_lea.vmem %s536_s21, %s1820_s19 [#allocation3] }
  0x68   : >> { %795 = vperm.xlu1 %1435, %v697_v13   ;;  %721 = vperm.xlu0 %1434, %v695_v14   ;;  %v696_v16 = vld [vmem:[%s694_s3 + $0x4] sm:$0xf]  ;;  %v700_v17 = vld [vmem:[%s694_s3 + $0x14] sm:$0xf]  ;;  %v699_v18 = vld [vmem:[%s694_s3 + $0x10] sm:$0xf]  ;;  %s1023_s12 = scalar_lea.vmem %s622_s15, %s1820_s19 [#allocation5] }
  0x69   : >> { %v704_v19 = vld [vmem:[%s703_s13] sm:$0xf]  ;;  %v701_v20 = vld [vmem:[%s694_s3 + $0x18] sm:$0xf]  ;;  %v706_v21 = vld [vmem:[%s703_s13 + $0x8] sm:$0xf] }
  0x6a   : >> { %v705_v22 = vld [vmem:[%s703_s13 + $0x4] sm:$0xf]  ;;  %v702_v23 = vld [vmem:[%s694_s3 + $0x1c] sm:$0xf]  ;;  %v707_v24 = vld [vmem:[%s703_s13 + $0xc] sm:$0xf] }
  0x6b   : >> { %v709_v25 = vld [vmem:[%s703_s13 + $0x14] sm:$0xf]  ;;  %v708_v26 = vld [vmem:[%s703_s13 + $0x10] sm:$0xf]  ;;  %v711_v27 = vld [vmem:[%s703_s13 + $0x1c] sm:$0xf] }
  0x6c   : >> { %831 = vperm.xlu1 %1435, %v698_v15   ;;  %759 = vperm.xlu0 %1434, %v696_v16   ;;  %v710_v28 = vld [vmem:[%s703_s13 + $0x18] sm:$0xf]  ;;  %v1822_v30 = vshrl.u32 %v712_v29, 7  ;;  %v690_v32 = vld [vmem:[%s689_s22] sm:$0xff]  ;;  %vm1013_vm6 = vcmask 1046528   ;;  %s686_s1 = sadd.s32 1, %s1578_s1  }
  0x6d   : >> { %v1838_v46 = vld [vmem:[%s691_s29] sm:$0xff]  ;;  %p683_p7 = scmp.ge.s32.totalorder %s686_s1, 2  }
  0x6e   : >> { %v714_v31 = vsub.s32 0, %v1822_v30  ;;  %v752_v34 = vsub.s32 1, %v1822_v30  ;;  %v788_v36 = vsub.s32 2, %v1822_v30  ;;  %v824_v40 = vsub.s32 3, %v1822_v30  ;;  %s1325_s24 = sshll.u32 (%p683_p7), %s1546_s16, 2  ;;  %s1318_s10 = sshll.u32 (%p683_p7), %s1554_s18, 3 }
  0x6f   : >> { %v860_v45 = vsub.s32 4, %v1822_v30  ;;  %v896_v49 = vsub.s32 5, %v1822_v30  ;;  %v1845_v51 = vmul.f32 %v1838_v46, %v690_v32  ;;  %v932_v58 = vsub.s32 6, %v1822_v30  ;;  %s1039_s30 = sadd.s32 (%p683_p7), %s1550_s17, %s1325_s24  ;;  %s1044_s8 = sshll.u32 (%p683_p7), %s622_s15, 4  ;;  %s1932_s8 = int_to_ptr.vmem [resolvable:$true] %s1044_s8 }
  0x70   : >> { %903 = vperm.xlu1 %1435, %v700_v17   ;;  %867 = vperm.xlu0 %1434, %v699_v18   ;;  %v715_v33 = vrot.slane %v690_v32, %v714_v31  ;;  %v753_v37 = vrot.slane %v690_v32, %v752_v34  ;;  %v789_v39 = vrot.slane %v690_v32, %v788_v36  ;;  %v968_v61 = vsub.s32 7, %v1822_v30  ;;  %s1041_s11 = sadd.s32 (%p683_p7), %s1318_s10, %s1039_s30  ;;  %s2059_s20 = sld [smem:[#allocation28_spill]] (%p683_p7) }
  0x71   : >> { %v825_v43 = vrot.slane %v690_v32, %v824_v40  ;;  %v861_v50 = vrot.slane %v690_v32, %v860_v45  ;;  %v897_v56 = vrot.slane %v690_v32, %v896_v49  ;;  %v738_v60 = vrot.slane %v1845_v51, %v714_v31  ;;  %s1319_s23 = sshll.u32 (%p683_p7), %s1041_s11, 7  ;;  %s2061_s28 = sand.u32 (%p683_p7), 1, %s1538_s14  }
  0x72   : >> { %v716_v35 = vmul.f32 %v715_v33, %v1794_v5  ;;  %v754_v41 = vmul.f32 %v753_v37, %v1794_v5  ;;  %v790_v42 = vmul.f32 %v789_v39, %v1794_v5  ;;  %v933_v4 = vrot.slane %v690_v32, %v932_v58  ;;  %s1941_s25 = scalar_lea.sflag (%p683_p7), [#allocation6], %s2061_s28  ;;  %s1452_s16 = scalar_lea.vmem (%p683_p7), %s1932_s8, 256 }
  0x73   : >> { %v826_v48 = vmul.f32 %v825_v43, %v1794_v5  ;;  %v862_v57 = vmul.f32 %v861_v50, %v1794_v5  ;;  %v898_v2 = vmul.f32 %v897_v56, %v1794_v5  ;;  %v775_v15 = vrot.slane %v1845_v51, %v752_v34  ;;  %p1453_p8 = scmp.ne.s32.totalorder (%p683_p7), %s1932_s8, %s1452_s16  ;;  %s1582_s17 = smov (%p683_p7), [#allocation5]  }
  0x74   : >> { %728 = vperm.xlu1 %1435, %v704_v19   ;;  %939 = vperm.xlu0 %1434, %v701_v20   ;;  %v717_v38 = vmul.f32 1.442695, %v716_v35  ;;  %v755_v44 = vmul.f32 1.442695, %v754_v41  ;;  %v791_v47 = vmul.f32 1.442695, %v790_v42  ;;  %v811_v19 = vrot.slane %v1845_v51, %v788_v36 }
  0x75   : >> { %v827_v55 = vmul.f32 1.442695, %v826_v48  ;;  %v863_v3 = vmul.f32 1.442695, %v862_v57  ;;  %v883_v50 = vrot.slane %v1845_v51, %v860_v45  ;;  %p1454_p9 = pnand (%p683_p7), %p1453_p8, %p1709_p6  ;;  %s1456_s18 = sshll.u32 (%p683_p7), %s1582_s17, 4  ;;  %s1457_s18 = int_to_ptr.vmem [resolvable:$false] %s1456_s18 }
  0x76   : >> { %1436 = vpow2.f32 %v717_v38  ;;  %s2060_s0 = smov (%p683_p7), %s2059_s20  ;;  %s1937_s5 = scalar_lea.hbm (%p683_p7), %s2059_s20, %s1319_s23 }
  0x77   : >> { %1438 = vpow2.f32 %v755_v44  ;;  %p1455_p11 = pneg (%p683_p7), %p1454_p9  ;;  %s1458_s26 = scalar_lea.vmem (%p683_p7), %s1457_s18, 512 }
  0x78   : >> { %802 = vperm.xlu1 %1435, %v706_v21   ;;  %766 = vperm.xlu0 %1434, %v705_v22   ;;  %1440 = vpow2.f32 %v791_v47  ;;  %v899_v21 = vmul.f32 1.442695, %v898_v2  ;;  %p1459_p12 = scmp.lt.s32.totalorder (%p683_p7), %s1932_s8, %s1457_s18  ;;  %p1460_p13 = scmp.lt.s32.totalorder (%p683_p7), %s1458_s26, %s1452_s16 }
  0x79   : >> { %1442 = vpow2.f32 %v827_v55 }
  0x7a   : >> { %1444 = vpow2.f32 %v863_v3  ;;  %p1461_p0 = por (%p683_p7), %p1460_p13, %p1459_p12 }
  0x7b   : >> { %1446 = vpow2.f32 %v899_v21 }
  0x7c   : >> { %975 = vperm.xlu1 %1435, %v702_v23   ;;  %838 = vperm.xlu0 %1434, %v707_v24   ;;  %v934_v23 = vmul.f32 %v933_v4, %v1794_v5  ;;  %p1462_p1 = pnand (%p683_p7), %p1461_p0, %p1455_p11 }
  0x7e   : >> { %v935_v36 = vmul.f32 1.442695, %v934_v23  ;;  %v991_v23 = vrot.slane %v1845_v51, %v968_v61 }
  0x80   : >> { %910 = vperm.xlu1 %1435, %v709_v25   ;;  %874 = vperm.xlu0 %1434, %v708_v26   ;;  %v1437_v52 = vpop.eup %1436  ;;  %1448 = vpow2.f32 %v935_v36 }
  0x81   : >> { %v733_v63 = vmul.f32 %v1574_v11, %v1437_v52  ;;  %v1439_v16 = vpop.eup %1438  ;;  %v969_v11 = vrot.slane %v690_v32, %v968_v61  ;;  %v847_v32 = vrot.slane %v1845_v51, %v824_v40 }
  0x82   : >> { %v1441_v24 = vpop.eup %1440 }
  0x83   : >> { %v970_v29 = vmul.f32 %v969_v11, %v1794_v5  ;;  %v1443_v42 = vpop.eup %1442 }
  0x84   : >> { %982 = vperm.xlu1 %1435, %v711_v27   ;;  %946 = vperm.xlu0 %1434, %v710_v28  }
  0x85   : >> { %v971_v43 = vmul.f32 1.442695, %v970_v29 }
  0x87   : >> { %1450 = vpow2.f32 %v971_v43 }
  0xe7   : >> { %v796_v53 = vpop.permute.xlu1 %795  ;;  %v722_v54 = vpop.permute.xlu0 %721 }
  0xe8   : >> { %v724_v59 = vmul.f32 %v722_v54, %v1796_v6  ;;  %v798_v12 = vmul.f32 %v796_v53, %v1796_v6 }
  0xea   : >> { %v725_v62 = vadd.f32 %v724_v59, %v1798_v7  ;;  %v799_v25 = vadd.f32 %v798_v12, %v1798_v7  ;;  %v1445_v59 = vpop.eup %1444 }
  0xeb   : >> { %v832_v0 = vpop.permute.xlu1 %831  ;;  %v760_v1 = vpop.permute.xlu0 %759 }
  0xec   : >> { %v739_v13 = vmul.f32 %v738_v60, %v725_v62  ;;  %v762_v14 = vmul.f32 %v760_v1, %v1796_v6  ;;  %v834_v26 = vmul.f32 %v832_v0, %v1796_v6  ;;  %v812_v37 = vmul.f32 %v811_v19, %v799_v25 }
  0xed   : >> { %v919_v60 = vrot.slane %v1845_v51, %v896_v49  ;;  %v955_v19 = vrot.slane %v1845_v51, %v932_v58 }
  0xee   : >> { %v740_v17 = vadd.f32 %v739_v13, %v733_v63  ;;  %v763_v18 = vadd.f32 %v762_v14, %v1798_v7  ;;  %v835_v38 = vadd.f32 %v834_v26, %v1798_v7 }
  0xef   : >> { %v904_v20 = vpop.permute.xlu1 %903  ;;  %v868_v22 = vpop.permute.xlu0 %867 }
  0xf0   : >> { %v771_v27 = vmul.f32 %v1439_v16, %v740_v17  ;;  %v776_v28 = vmul.f32 %v775_v15, %v763_v18  ;;  %v870_v33 = vmul.f32 %v868_v22, %v1796_v6  ;;  %v906_v47 = vmul.f32 %v904_v20, %v1796_v6 }
  0xf1   : >> { %v848_v54 = vmul.f32 %v847_v32, %v835_v38 }
  0xf2   : >> { %v777_v31 = vadd.f32 %v776_v28, %v771_v27  ;;  %v871_v40 = vadd.f32 %v870_v33, %v1798_v7  ;;  %v907_v63 = vadd.f32 %v906_v47, %v1798_v7 }
  0xf3   : >> { %v729_v34 = vpop.permute.xlu1 %728  ;;  %v940_v35 = vpop.permute.xlu0 %939 }
  0xf4   : >> { %v807_v39 = vmul.f32 %v1441_v24, %v777_v31  ;;  %v731_v41 = vmul.f32 %v729_v34, %v1800_v8  ;;  %v884_v2 = vmul.f32 %v883_v50, %v871_v40  ;;  %v942_v4 = vmul.f32 %v940_v35, %v1796_v6 }
  0xf5   : >> { %v920_v25 = vmul.f32 %v919_v60, %v907_v63 }
  0xf6   : >> { %v813_v44 = vadd.f32 %v812_v37, %v807_v39  ;;  %v732_v48 = vadd.f32 %v731_v41, %v1802_v9  ;;  %v943_v26 = vadd.f32 %v942_v4, %v1798_v7 }
  0xf7   : >> { %v803_v52 = vpop.permute.xlu1 %802  ;;  %v767_v53 = vpop.permute.xlu0 %766 }
  0xf8   : >> { %v843_v55 = vmul.f32 %v1443_v42, %v813_v44  ;;  %v741_v56 = vmul.f32 %v740_v17, %v732_v48  ;;  %v805_v57 = vmul.f32 %v803_v52, %v1800_v8  ;;  %v769_v62 = vmul.f32 %v767_v53, %v1800_v8  ;;  %v1447_v17 = vpop.eup %1446 }
  0xf9   : >> { %v1449_v35 = vpop.eup %1448  ;;  %v956_v40 = vmul.f32 %v955_v19, %v943_v26 }
  0xfa   : >> { %v849_v45 = vadd.f32 %v848_v54, %v843_v55  ;;  %v743_v0 = vsel %vm742_vm0, %v741_v56, 0.0  ;;  %v806_v1 = vadd.f32 %v805_v57, %v1802_v9  ;;  %v770_v12 = vadd.f32 %v769_v62, %v1802_v9  ;;  %v1451_v41 = vpop.eup %1450 }
  0xfb   : >> { %v744_v3 = vrot.slane %v743_v0, 4  ;;  %v976_v13 = vpop.permute.xlu1 %975  ;;  %v839_v14 = vpop.permute.xlu0 %838 }
  0xfc   : >> { %v879_v15 = vmul.f32 %v1445_v59, %v849_v45  ;;  %v814_v49 = vmul.f32 %v813_v44, %v806_v1  ;;  %v978_v16 = vmul.f32 %v976_v13, %v1796_v6  ;;  %v841_v11 = vmul.f32 %v839_v14, %v1800_v8 }
  0xfd   : >> { %v745_v18 = vadd.f32 %v744_v3, %v743_v0  ;;  %v778_v20 = vmul.f32 %v777_v31, %v770_v12 }
  0xfe   : >> { %v885_v21 = vadd.f32 %v884_v2, %v879_v15  ;;  %v815_v22 = vsel %vm742_vm0, %v814_v49, 0.0  ;;  %v842_v24 = vadd.f32 %v841_v11, %v1802_v9  ;;  %v979_v31 = vadd.f32 %v978_v16, %v1798_v7 }
  0xff   : >> { %v816_v27 = vrot.slane %v815_v22, 4  ;;  %v779_v28 = vsel %vm742_vm0, %v778_v20, 0.0  ;;  %v911_v29 = vpop.permute.xlu1 %910  ;;  %v875_v32 = vpop.permute.xlu0 %874  ;;  %v746_v36 = vrot.slane %v745_v18, 2 }
 0x100   : >> { %v915_v33 = vmul.f32 %v1447_v17, %v885_v21  ;;  %v780_v58 = vrot.slane %v779_v28, 4  ;;  %v850_v34 = vmul.f32 %v849_v45, %v842_v24  ;;  %v913_v51 = vmul.f32 %v911_v29, %v1800_v8 }
 0x101   : >> { %v817_v30 = vadd.f32 %v816_v27, %v815_v22  ;;  %v877_v61 = vmul.f32 %v875_v32, %v1800_v8  ;;  %v747_v54 = vadd.f32 %v746_v36, %v745_v18  ;;  %v992_v55 = vmul.f32 %v991_v23, %v979_v31 }
 0x102   : >> { %v921_v37 = vadd.f32 %v920_v25, %v915_v33  ;;  %v781_v38 = vadd.f32 %v780_v58, %v779_v28  ;;  %v851_v39 = vsel %vm742_vm0, %v850_v34, 0.0  ;;  %v914_v44 = vadd.f32 %v913_v51, %v1802_v9 }
 0x103   : >> { %v818_v42 = vrot.slane %v817_v30, 2  ;;  %v852_v43 = vrot.slane %v851_v39, 4  ;;  %v983_v47 = vpop.permute.xlu1 %982  ;;  %v878_v52 = vadd.f32 %v877_v61, %v1802_v9  ;;  %v947_v53 = vpop.permute.xlu0 %946  ;;  %v748_v16 = vrot.slane %v747_v54, 1 }
 0x104   : >> { %v951_v48 = vmul.f32 %v1449_v35, %v921_v37  ;;  %v782_v50 = vrot.slane %v781_v38, 2  ;;  %v922_v57 = vmul.f32 %v921_v37, %v914_v44  ;;  %v985_v63 = vmul.f32 %v983_v47, %v1800_v8 }
 0x105   : >> { %v853_v56 = vadd.f32 %v852_v43, %v851_v39  ;;  %v886_v62 = vmul.f32 %v885_v21, %v878_v52  ;;  %v819_v45 = vadd.f32 %v818_v42, %v817_v30  ;;  %v949_v2 = vmul.f32 %v947_v53, %v1800_v8 }
 0x106   : >> { %v957_v59 = vadd.f32 %v956_v40, %v951_v48  ;;  %v783_v60 = vadd.f32 %v782_v50, %v781_v38  ;;  %v923_v1 = vsel %vm742_vm0, %v922_v57, 0.0  ;;  %v986_v17 = vadd.f32 %v985_v63, %v1802_v9 }
 0x107   : >> { %v854_v0 = vrot.slane %v853_v56, 2  ;;  %v924_v4 = vrot.slane %v923_v1, 4  ;;  %v887_v12 = vsel %vm742_vm0, %v886_v62, 0.0  ;;  %v950_v49 = vadd.f32 %v949_v2, %v1802_v9 }
 0x108   : >> { %v784_v3 = vrot.slane %v783_v60, 1  ;;  %v987_v13 = vmul.f32 %v1451_v41, %v957_v59  ;;  %v888_v15 = vrot.slane %v887_v12, 4  ;;  %v820_v21 = vrot.slane %v819_v45, 1 }
 0x109   : >> { %v855_v14 = vadd.f32 %v854_v0, %v853_v56  ;;  %v925_v11 = vadd.f32 %v924_v4, %v923_v1  ;;  %v958_v20 = vmul.f32 %v957_v59, %v950_v49  ;;  %v749_v28 = vadd.f32 %v748_v16, %v747_v54 }
 0x10a   : >> { %v993_v18 = vadd.f32 %v992_v55, %v987_v13   ;;  %v889_v19 = vadd.f32 %v888_v15, %v887_v12  ;;  %v785_v22 = vadd.f32 %v784_v3, %v783_v60  ;;  %v821_v34 = vadd.f32 %v820_v21, %v819_v45 }
 0x10b   : >> { %v926_v23 = vrot.slane %v925_v11, 2  ;;  %v856_v25 = vrot.slane %v855_v14, 1  ;;  %v959_v27 = vsel %vm742_vm0, %v958_v20, 0.0  ;;  %v1021_v54 = vmul.f32 %v1804_v10, %v1838_v46 }
 0x10c   : >> { %v994_v24 = vmul.f32 %v993_v18, %v986_v17  ;;  %v890_v26 = vrot.slane %v889_v19, 2  ;;  %v960_v33 = vrot.slane %v959_v27, 4  ;;  %v1003_v35 = vsel %vm1002_vm1, %v749_v28, %v785_v22  ;;  %1025 = vst [vmem:[#allocation2] sm:$0xf] (%p683_p7), %v993_v18 }
 0x10d   : >> { %v927_v29 = vadd.f32 %v926_v23, %v925_v11  ;;  %v857_v30 = vadd.f32 %v856_v25, %v855_v14  ;;  %v1005_v42 = vsel %vm1004_vm2, %v1003_v35, %v821_v34  ;;  %v2057_v11 = vmov %v993_v18 }
 0x10e   : >> { %v995_v32 = vsel %vm742_vm0, %v994_v24, 0.0  ;;  %v891_v58 = vadd.f32 %v890_v26, %v889_v19  ;;  %v961_v36 = vadd.f32 %v960_v33, %v959_v27 }
 0x10f   : >> { %v996_v31 = vrot.slane %v995_v32, 4  ;;  %v928_v51 = vrot.slane %v927_v29, 1  ;;  %v1007_v44 = vsel %vm1006_vm3, %v1005_v42, %v857_v30 }
 0x110   : >> { %v892_v61 = vrot.slane %v891_v58, 1  ;;  %v962_v38 = vrot.slane %v961_v36, 2 }
 0x111   : >> { %v997_v37 = vadd.f32 %v996_v31, %v995_v32  ;;  %v929_v47 = vadd.f32 %v928_v51, %v927_v29 }
 0x112   : >> { %v893_v39 = vadd.f32 %v892_v61, %v891_v58  ;;  %v963_v43 = vadd.f32 %v962_v38, %v961_v36 }
 0x113   : >> { %v998_v41 = vrot.slane %v997_v37, 2 }
 0x114   : >> { %v1008_v40 = vsel %vm742_vm0, %v1007_v44, %v893_v39  ;;  %v964_v50 = vrot.slane %v963_v43, 1 }
 0x115   : >> { %v999_v48 = vadd.f32 %v998_v41, %v997_v37  ;;  %v1010_v56 = vsel %vm1009_vm4, %v1008_v40, %v929_v47 }
 0x116   : >> { %v965_v53 = vadd.f32 %v964_v50, %v963_v43 }
 0x117   : >> { %v1000_v52 = vrot.slane %v999_v48, 1 }
 0x118   : >> { %v1012_v57 = vsel %vm1011_vm5, %v1010_v56, %v965_v53  ;;  %685 = sbr.rel (!%p683_p7) target bundleno = 101 (0x65), region = 224 }
 0x119   : >> { %v1001_v55 = vadd.f32 %v1000_v52, %v999_v48 }
 0x11b   : >> { %v1014_v59 = vsel %vm1013_vm6, %v1012_v57, %v1001_v55 }
 0x11c   : >> { %v1022_v60 = vadd.f32 %v1021_v54, %v1014_v59 }
 0x11e   : >> { %1024 = vst [vmem:[%s1023_s12] sm:$0xff] %v1022_v60 }
 0x11f   : > { %1465 = shalt.err (!%p1462_p1)
}
 0x120   : > { %s1466_s21 = scalar_lea.hbm %s1937_s5, 256  ;;  %s1470_s2 = scalar_lea.hbm %s2060_s0, 2048 }
 0x121   : > { %p1467_p2 = scmp.ne.s32.totalorder %s1937_s5, %s1466_s21  ;;  %p1471_p5 = scmp.lt.u32.totalorder %s1937_s5, %s2060_s0 }
 0x122   : > { %p1472_p7 = scmp.lt.u32.totalorder %s1470_s2, %s1466_s21  ;;  %p1474_p9 = scmp.lt.u32.totalorder %s1466_s21, %s1937_s5 }
 0x123   : > { %p1468_p3 = pnand %p1467_p2, %p1709_p6 }
 0x124   : > { %p1473_p8 = por %p1472_p7, %p1471_p5 }
 0x125   : > { %p1469_p4 = pneg %p1468_p3 }
 0x126   : > { %p1475_p11 = por %p1474_p9, %p1473_p8 }
 0x128   : > { %p1476_p12 = pnand %p1475_p11, %p1469_p4 }
 0x12a   : > { %1479 = shalt.err (!%p1476_p12)
}
 0x12b   : > { %s1583_s19 = smov 128   ;;  %s1584_s22 = smov 256  }
 0x12c   : > { %s1585_s29 = smov 8  }
 0x12d   : > { %1326 = dma.vmem_to_hbm [thread:$0]  (%p1709_p6), %s1932_s8, 256, %s1937_s5, %s1941_s25, %s1583_s19, %s1584_s22, %s1585_s29  }
 0x12e PF: > { %s2062_s12 = sld [smem:[#allocation13_spill]]  ;;  %s2063_s24 = sld [smem:[#allocation8_spill]] }
 0x134   : > { %p1332_p13 = scmp.ge.s32.totalorder %s2062_s12, 2  ;;  %s1059_s10 = sand.u32 1, %s2063_s24  }
 0x135   : > { %s1060_s11 = scalar_lea.sflag [#allocation6], %s1059_s10 }
 0x136   : > { %p1329_p0 = pnand %p1332_p13, %p1721_p10 }
 0x138   : > { %1529 = dma.done.wait (!%p1329_p0), %s1060_s11, 256  }
 0x139   : > { %1531 = vsyncadd (!%p1329_p0), %s1060_s11, 4294967040  ;;  %s23_s22 = sadd.s32 1, %s2062_s12   ;;  %s2065_s23 = sld [smem:[#allocation9_spill]] }
 0x13a   : > { %p20_p1 = scmp.ge.s32.totalorder %s23_s22, 10   ;;  %s2066_s15 = sld [smem:[#allocation19_spill]] }
 0x13b   : > { %s2067_s16 = sld [smem:[#allocation10_spill]]  ;;  %s2068_s17 = sld [smem:[#allocation11_spill]] }
 0x13c   : > { %s2069_s18 = sld [smem:[#allocation12_spill]]  ;;  %s2070_s19 = sld [smem:[#allocation14_spill]] }
 0x13d   : > { %s2071_s20 = sld [smem:[#allocation15_spill]]  ;;  %s2072_s21 = sld [smem:[#allocation17_spill]] }
 0x13e   : > { %s2073_s13 = smov %s1538_s14  ;;  %22 = sbr.rel (!%p20_p1) target bundleno = 16 (0x10), region = 235 }
 0x13f   : > { %s2074_s14 = smov %s2065_s23 }
 0x145   :  { %1065 = vsyncpa [#allocation6], 1 }
 0x146   :  { %1067 = vsyncpa [#allocation6 + $0x1], 1 }

</bundles_post_ra>
